<compile_context>
chip_gen: v7x
topology: tpu7x:2x2x1
jax: 0.10.0
libtpu: 0.0.40
codegen_flags: <defaults>
</compile_context>

<pallas_src>
import functools

import jax
import jax.numpy as jnp
from jax.experimental import pallas as pl
from jax.experimental.pallas import tpu as pltpu


def _round_up(a: int, m: int) -> int:
    return ((a + m - 1) // m) * m


def _make_mlp_kernel(depth: int, logistic: bool):
    """Kernel for `depth` hidden Linear+ReLU layers + Linear(width,1) head (+sigmoid).

    Ref layout (per grid step i over row tiles):
      x_ref : (input_dim, TILE_N)            lane-dense activations tile (compute dtype)
      then, for each hidden layer l:  w_l (width, fan_in) [PyTorch (out,in) layout],
                                      b_l (width, 1) f32
      head:  w_out (width, 1) f32, b_out (1, 1) f32
      out_ref: (1, 8, TILE_N // 8) f32       sublane/lane-dense predictions for this tile
    """

    def kernel(x_ref, *refs):
        out_ref = refs[-1]
        p = refs[:-1]

        x = x_ref[...]                       # (input_dim, TILE_N)
        w1 = p[0][...]                       # (width, input_dim)
        b1 = p[1][...]                       # (width, 1) f32

        # Layer 1 (MXU): (width, in) @ (in, TILE_N) -> (width, TILE_N), f32 accum.
        h = jnp.dot(w1, x, preferred_element_type=jnp.float32)
        h = jnp.maximum(h + b1, 0.0)         # f32 bias-add + ReLU (VPU)

        # Hidden layers 2..depth: (width, width) @ (width, TILE_N)
        for l in range(1, depth):
            w = p[2 * l][...]
            b = p[2 * l + 1][...]
            h = jnp.dot(w, h.astype(w.dtype),
                        preferred_element_type=jnp.float32)
            h = jnp.maximum(h + b, 0.0)

        # Head: Linear(width, 1) as VPU multiply + sublane reduce -> (1, TILE_N).
        w_out = p[2 * depth][...]            # (width, 1) f32
        b_out = p[2 * depth + 1][...]        # (1, 1) f32
        y = jnp.sum(h * w_out, axis=0, keepdims=True) + b_out

        if logistic:
            y = jax.nn.sigmoid(y)            # EUP

        # Sublane-dense store: (1, TILE_N) -> (1, 8, TILE_N//8) row-major.
        sub = out_ref.shape[-1]
        out_ref[...] = y.reshape(1, 8, sub).astype(out_ref.dtype)

    return kernel


def init_params(key, input_dim, depth, width, dtype=jnp.float32):
    """Init mirroring nn.Linear: W ~ U(-1/sqrt(fan_in), 1/sqrt(fan_in)), PyTorch
    (out_features, in_features) weight layout, (out_features,) bias."""
    dims = [input_dim] + [width] * depth + [1]
    params = []
    for fan_in, fan_out in zip(dims[:-1], dims[1:]):
        key, kw, kb = jax.random.split(key, 3)
        bound = 1.0 / (fan_in ** 0.5)
        w = jax.random.uniform(kw, (fan_out, fan_in), dtype, -bound, bound)
        b = jax.random.uniform(kb, (fan_out,), dtype, -bound, bound)
        params.append((w, b))
    return params


@functools.partial(jax.jit,
                   static_argnames=("logistic", "compute_dtype", "tile_n_max"))
def vanilla_net_forward(x, params, logistic=False,
                        compute_dtype=jnp.bfloat16, tile_n_max=16384):
    """Forward pass of VanillaNetBase.  x: (n, input_dim) -> (n, 1) float32.

    compute_dtype=jnp.bfloat16 (default) feeds bf16 operands to the MXU with f32
    accumulation and halves HBM traffic for the dominant x stream (v6e/v7x fast
    path; also valid on v5e).  Pass jnp.float32 for an exact-f32 path.
    """
    n, input_dim = x.shape
    depth = len(params) - 1                  # number of hidden (Linear+ReLU) layers
    width = params[0][0].shape[0]

    # Row tile: multiple of 128 lanes (unmasked vector ops / stores).  For
    # mid-size batches target >= 2 tiles so the "parallel" row axis can span both
    # TensorCores on v7x; cap keeps double-buffered VMEM well under 64 MiB.
    target = -(-n // 2) if n >= 256 else n
    tile_n = min(tile_n_max, _round_up(max(target, 1), 128))
    num_tiles = pl.cdiv(n, tile_n)
    n_pad = num_tiles * tile_n

    xp = x.astype(compute_dtype)
    if n_pad != n:
        xp = jnp.pad(xp, ((0, n_pad - n), (0, 0)))
    xT = xp.T                                # (input_dim, n_pad), lane-dense blocks

    # Flatten params. Hidden weights stay in PyTorch (out,in) layout (cast to
    # compute_dtype for the MXU); biases / head weight stay f32 (VPU/EUP path).
    flat = []
    for li, (w, b) in enumerate(params):
        if li < depth:
            flat.append(w.astype(compute_dtype))                 # (out, in)
            flat.append(b.reshape(-1, 1).astype(jnp.float32))    # (out, 1)
        else:
            flat.append(w.reshape(-1, 1).astype(jnp.float32))    # (width, 1) head
            flat.append(b.reshape(1, 1).astype(jnp.float32))     # (1, 1)

    kernel = _make_mlp_kernel(depth, logistic)

    # x: lane-dense (input_dim, TILE_N) blocks; weights VMEM-resident (constant maps).
    in_specs = [pl.BlockSpec((input_dim, tile_n), lambda i: (0, i))]
    for p in flat:
        in_specs.append(pl.BlockSpec(p.shape, lambda i: (0, 0)))
    out_specs = pl.BlockSpec((1, 8, tile_n // 8), lambda i: (i, 0, 0))

    flops = 2 * n_pad * (input_dim * width + (depth - 1) * width * width + width)
    bytes_accessed = (xT.size * xT.dtype.itemsize
                      + sum(p.size * p.dtype.itemsize for p in flat)
                      + n_pad * 4)
    transcendentals = n_pad if logistic else 0

    out = pl.pallas_call(
        kernel,
        out_shape=jax.ShapeDtypeStruct((num_tiles, 8, tile_n // 8), jnp.float32),
        grid=(num_tiles,),
        in_specs=in_specs,
        out_specs=out_specs,
        compiler_params=pltpu.CompilerParams(
            dimension_semantics=("parallel",),
            vmem_limit_bytes=48 * 1024 * 1024),
        cost_estimate=pl.CostEstimate(flops=flops,
                                      transcendentals=transcendentals,
                                      bytes_accessed=bytes_accessed),
    )(xT, *flat)

    # (num_tiles, 8, tile_n//8) flattens to original row order; drop padding rows.
    return out.reshape(-1)[:n].reshape(n, 1)


def _reference_forward(x, params, logistic=False):
    """Pure-JAX reference with PyTorch semantics: y = x @ W.T + b."""
    h = x.astype(jnp.float32)
    for w, b in params[:-1]:
        h = jnp.maximum(h @ w.T.astype(jnp.float32) + b, 0.0)
    w, b = params[-1]
    y = h @ w.T.astype(jnp.float32) + b
    if logistic:
        y = jax.nn.sigmoid(y)
    return y


if __name__ == "__main__":
    # Small shapes consistent with the module's forward: x is (n, input_dim).
    n, input_dim, depth, width = 8, 16, 3, 32
    logistic = True

    key = jax.random.PRNGKey(0)
    key, kx = jax.random.split(key)
    x = jax.random.normal(kx, (n, input_dim), jnp.float32)
    params = init_params(key, input_dim, depth, width)

    # f32 path, strict check.
    out = vanilla_net_forward(x, params, logistic=logistic,
                              compute_dtype=jnp.float32)
    out = jax.block_until_ready(out)
    ref = _reference_forward(x, params, logistic=logistic)
    assert out.shape == (n, 1)
    assert jnp.allclose(out, ref, atol=1e-5, rtol=1e-5), \
        float(jnp.max(jnp.abs(out - ref)))

    # Ragged batch (exercises padding + multi-tile path) with the default bf16
    # operands (f32 MXU accumulation); looser tolerance for bf16 rounding.
    n2 = 300
    key, kx2 = jax.random.split(key)
    x2 = jax.random.normal(kx2, (n2, input_dim), jnp.float32)
    out2 = vanilla_net_forward(x2, params, logistic=logistic)
    out2 = jax.block_until_ready(out2)
    ref2 = _reference_forward(x2, params, logistic=logistic)
    assert out2.shape == (n2, 1)
    assert float(jnp.max(jnp.abs(out2 - ref2))) < 5e-2

    print("KERNEL_OK")
</pallas_src>

<mosaic_0001>
module attributes {stable_mosaic.version = 11 : i64} {
  func.func @kernel(%arg0: i32, %arg1: memref<16x128xf32, #tpu.memory_space<vmem>>, %arg2: memref<32x16xf32, #tpu.memory_space<vmem>>, %arg3: memref<32x1xf32, #tpu.memory_space<vmem>>, %arg4: memref<32x32xf32, #tpu.memory_space<vmem>>, %arg5: memref<32x1xf32, #tpu.memory_space<vmem>>, %arg6: memref<32x32xf32, #tpu.memory_space<vmem>>, %arg7: memref<32x1xf32, #tpu.memory_space<vmem>>, %arg8: memref<32x1xf32, #tpu.memory_space<vmem>>, %arg9: memref<1x1xf32, #tpu.memory_space<vmem>>, %arg10: memref<1x8x16xf32, #tpu.memory_space<vmem>>) attributes {dimension_semantics = [#tpu.dimension_semantics<parallel>], iteration_bounds = array<i64: 1>, scalar_prefetch = 0 : i64, scratch_operands = 0 : i64, tpu.core_type = #tpu.core_type<tc>, window_params = [{transform_indices = @transform_0, window_bounds = array<i64: 16, 128>}, {pipeline_mode = #tpu.pipeline_mode<synchronous>, transform_indices = @transform_1, window_bounds = array<i64: 32, 16>}, {pipeline_mode = #tpu.pipeline_mode<synchronous>, transform_indices = @transform_2, window_bounds = array<i64: 32, 1>}, {pipeline_mode = #tpu.pipeline_mode<synchronous>, transform_indices = @transform_3, window_bounds = array<i64: 32, 32>}, {pipeline_mode = #tpu.pipeline_mode<synchronous>, transform_indices = @transform_4, window_bounds = array<i64: 32, 1>}, {pipeline_mode = #tpu.pipeline_mode<synchronous>, transform_indices = @transform_5, window_bounds = array<i64: 32, 32>}, {pipeline_mode = #tpu.pipeline_mode<synchronous>, transform_indices = @transform_6, window_bounds = array<i64: 32, 1>}, {pipeline_mode = #tpu.pipeline_mode<synchronous>, transform_indices = @transform_7, window_bounds = array<i64: 32, 1>}, {pipeline_mode = #tpu.pipeline_mode<synchronous>, transform_indices = @transform_8, window_bounds = array<i64: 1, 1>}, {transform_indices = @transform_9, window_bounds = array<i64: 1, 8, 16>}]} {
    %c0 = arith.constant 0 : index
    %c0_0 = arith.constant 0 : index
    %0 = vector.load %arg1[%c0, %c0_0] : memref<16x128xf32, #tpu.memory_space<vmem>>, vector<16x128xf32>
    %c0_1 = arith.constant 0 : index
    %c0_2 = arith.constant 0 : index
    %1 = vector.load %arg2[%c0_1, %c0_2] : memref<32x16xf32, #tpu.memory_space<vmem>>, vector<32x16xf32>
    %c0_3 = arith.constant 0 : index
    %c0_4 = arith.constant 0 : index
    %2 = vector.load %arg3[%c0_3, %c0_4] : memref<32x1xf32, #tpu.memory_space<vmem>>, vector<32x1xf32>
    %cst = arith.constant dense<0.000000e+00> : vector<32x128xf32>
    %3 = tpu.matmul %1, %0, %cst {dimension_numbers = #tpu.dot_dimension_numbers<[1], [0], [0], [1], [0, 0, 1, 1], [], []>} : vector<32x16xf32>, vector<16x128xf32>, vector<32x128xf32> -> vector<32x128xf32>
    %4 = vector.broadcast %2 : vector<32x1xf32> to vector<32x128xf32>
    %5 = arith.addf %3, %4 : vector<32x128xf32>
    %cst_5 = arith.constant 0.000000e+00 : f32
    %6 = vector.broadcast %cst_5 : f32 to vector<32x128xf32>
    %7 = arith.maximumf %5, %6 : vector<32x128xf32>
    %c0_6 = arith.constant 0 : index
    %c0_7 = arith.constant 0 : index
    %8 = vector.load %arg4[%c0_6, %c0_7] : memref<32x32xf32, #tpu.memory_space<vmem>>, vector<32x32xf32>
    %c0_8 = arith.constant 0 : index
    %c0_9 = arith.constant 0 : index
    %9 = vector.load %arg5[%c0_8, %c0_9] : memref<32x1xf32, #tpu.memory_space<vmem>>, vector<32x1xf32>
    %cst_10 = arith.constant dense<0.000000e+00> : vector<32x128xf32>
    %10 = tpu.matmul %8, %7, %cst_10 {dimension_numbers = #tpu.dot_dimension_numbers<[1], [0], [0], [1], [0, 0, 1, 1], [], []>} : vector<32x32xf32>, vector<32x128xf32>, vector<32x128xf32> -> vector<32x128xf32>
    %11 = vector.broadcast %9 : vector<32x1xf32> to vector<32x128xf32>
    %12 = arith.addf %10, %11 : vector<32x128xf32>
    %cst_11 = arith.constant 0.000000e+00 : f32
    %13 = vector.broadcast %cst_11 : f32 to vector<32x128xf32>
    %14 = arith.maximumf %12, %13 : vector<32x128xf32>
    %c0_12 = arith.constant 0 : index
    %c0_13 = arith.constant 0 : index
    %15 = vector.load %arg6[%c0_12, %c0_13] : memref<32x32xf32, #tpu.memory_space<vmem>>, vector<32x32xf32>
    %c0_14 = arith.constant 0 : index
    %c0_15 = arith.constant 0 : index
    %16 = vector.load %arg7[%c0_14, %c0_15] : memref<32x1xf32, #tpu.memory_space<vmem>>, vector<32x1xf32>
    %cst_16 = arith.constant dense<0.000000e+00> : vector<32x128xf32>
    %17 = tpu.matmul %15, %14, %cst_16 {dimension_numbers = #tpu.dot_dimension_numbers<[1], [0], [0], [1], [0, 0, 1, 1], [], []>} : vector<32x32xf32>, vector<32x128xf32>, vector<32x128xf32> -> vector<32x128xf32>
    %18 = vector.broadcast %16 : vector<32x1xf32> to vector<32x128xf32>
    %19 = arith.addf %17, %18 : vector<32x128xf32>
    %cst_17 = arith.constant 0.000000e+00 : f32
    %20 = vector.broadcast %cst_17 : f32 to vector<32x128xf32>
    %21 = arith.maximumf %19, %20 : vector<32x128xf32>
    %c0_18 = arith.constant 0 : index
    %c0_19 = arith.constant 0 : index
    %22 = vector.load %arg8[%c0_18, %c0_19] : memref<32x1xf32, #tpu.memory_space<vmem>>, vector<32x1xf32>
    %c0_20 = arith.constant 0 : index
    %c0_21 = arith.constant 0 : index
    %23 = vector.load %arg9[%c0_20, %c0_21] : memref<1x1xf32, #tpu.memory_space<vmem>>, vector<1x1xf32>
    %24 = vector.broadcast %22 : vector<32x1xf32> to vector<32x128xf32>
    %25 = arith.mulf %21, %24 : vector<32x128xf32>
    %cst_22 = arith.constant dense<0.000000e+00> : vector<128xf32>
    %26 = vector.multi_reduction <add>, %25, %cst_22 [0] : vector<32x128xf32> to vector<128xf32>
    %27 = vector.shape_cast %26 : vector<128xf32> to vector<1x128xf32>
    %28 = vector.broadcast %23 : vector<1x1xf32> to vector<1x128xf32>
    %29 = arith.addf %27, %28 : vector<1x128xf32>
    %30 = arith.negf %29 : vector<1x128xf32>
    %31 = math.exp %30 : vector<1x128xf32>
    %cst_23 = arith.constant 1.000000e+00 : f32
    %32 = vector.broadcast %cst_23 : f32 to vector<1x128xf32>
    %33 = arith.addf %32, %31 : vector<1x128xf32>
    %34 = arith.divf %32, %33 : vector<1x128xf32>
    %35 = vector.shape_cast %34 : vector<1x128xf32> to vector<1x8x16xf32>
    %c0_24 = arith.constant 0 : index
    %c0_25 = arith.constant 0 : index
    %c0_26 = arith.constant 0 : index
    %36 = vector.load %arg10[%c0_24, %c0_25, %c0_26] : memref<1x8x16xf32, #tpu.memory_space<vmem>>, vector<1x8x16xf32>
    tpu.vector_store %arg10[%c0_24, %c0_25, %c0_26], %35 {strides = array<i32>} : memref<1x8x16xf32, #tpu.memory_space<vmem>>, vector<1x8x16xf32>,
    return
  }
  func.func @transform_0(%arg0: i32) -> (i32, i32) {
    %c0_i32 = arith.constant 0 : i32
    %c0_i32_0 = arith.constant 0 : i32
    return %c0_i32, %arg0 : i32, i32
  }
  func.func @transform_1(%arg0: i32) -> (i32, i32) {
    %c0_i32 = arith.constant 0 : i32
    %c0_i32_0 = arith.constant 0 : i32
    %c0_i32_1 = arith.constant 0 : i32
    return %c0_i32, %c0_i32_0 : i32, i32
  }
  func.func @transform_2(%arg0: i32) -> (i32, i32) {
    %c0_i32 = arith.constant 0 : i32
    %c0_i32_0 = arith.constant 0 : i32
    %c0_i32_1 = arith.constant 0 : i32
    return %c0_i32, %c0_i32_0 : i32, i32
  }
  func.func @transform_3(%arg0: i32) -> (i32, i32) {
    %c0_i32 = arith.constant 0 : i32
    %c0_i32_0 = arith.constant 0 : i32
    %c0_i32_1 = arith.constant 0 : i32
    return %c0_i32, %c0_i32_0 : i32, i32
  }
  func.func @transform_4(%arg0: i32) -> (i32, i32) {
    %c0_i32 = arith.constant 0 : i32
    %c0_i32_0 = arith.constant 0 : i32
    %c0_i32_1 = arith.constant 0 : i32
    return %c0_i32, %c0_i32_0 : i32, i32
  }
  func.func @transform_5(%arg0: i32) -> (i32, i32) {
    %c0_i32 = arith.constant 0 : i32
    %c0_i32_0 = arith.constant 0 : i32
    %c0_i32_1 = arith.constant 0 : i32
    return %c0_i32, %c0_i32_0 : i32, i32
  }
  func.func @transform_6(%arg0: i32) -> (i32, i32) {
    %c0_i32 = arith.constant 0 : i32
    %c0_i32_0 = arith.constant 0 : i32
    %c0_i32_1 = arith.constant 0 : i32
    return %c0_i32, %c0_i32_0 : i32, i32
  }
  func.func @transform_7(%arg0: i32) -> (i32, i32) {
    %c0_i32 = arith.constant 0 : i32
    %c0_i32_0 = arith.constant 0 : i32
    %c0_i32_1 = arith.constant 0 : i32
    return %c0_i32, %c0_i32_0 : i32, i32
  }
  func.func @transform_8(%arg0: i32) -> (i32, i32) {
    %c0_i32 = arith.constant 0 : i32
    %c0_i32_0 = arith.constant 0 : i32
    %c0_i32_1 = arith.constant 0 : i32
    return %c0_i32, %c0_i32_0 : i32, i32
  }
  func.func @transform_9(%arg0: i32) -> (i32, i32, i32) {
    %c0_i32 = arith.constant 0 : i32
    %c0_i32_0 = arith.constant 0 : i32
    %c0_i32_1 = arith.constant 0 : i32
    return %arg0, %c0_i32, %c0_i32_0 : i32, i32, i32
  }
}

</mosaic_0001>

<bundles_post_ra>
// kernel: vanilla_net_forward.1
= control target key start
LH: loop header
LB: loop body
LE: loop exit
PB: predicated region body
PF: predicated region fallthrough
CT: control target
= control target key end

     0   :  { %vm64_vm0 = vcmask 130048   ;;  %v664_v3 = vmov 0   ;;  %vm194_vm1 = vcmask 261120   ;;  %s666_s17 = smov 112   ;;  %s667_s18 = smov 64   ;;  %s833_s0 = inlined_call_operand.vmem [shape: f32[16,128], index: 0, kind: input, shape index: {}]   ;;  %s834_s1 = inlined_call_operand.vmem [shape: f32[32,16], index: 1, kind: input, shape index: {}]   ;;  %s835_s2 = inlined_call_operand.vmem [shape: f32[32,1], index: 2, kind: input, shape index: {}]   ;;  %s836_s8 = inlined_call_operand.<no memory space> [shape: f32[1,1], index: 8, kind: input, shape index: {}]   ;;  %s837_s4 = inlined_call_operand.vmem [shape: f32[32,1], index: 4, kind: input, shape index: {}]   ;;  %s838_s6 = inlined_call_operand.vmem [shape: f32[32,1], index: 6, kind: input, shape index: {}]   ;;  %s839_s7 = inlined_call_operand.vmem [shape: f32[32,1], index: 7, kind: input, shape index: {}]   ;;  %s840_s3 = inlined_call_operand.vmem [shape: f32[32,32], index: 3, kind: input, shape index: {}]   ;;  %s841_s5 = inlined_call_operand.vmem [shape: f32[32,32], index: 5, kind: input, shape index: {}]   ;;  %s842_s9 = inlined_call_operand.vmem [shape: f32[1,8,16], index: 9, kind: output, shape index: {}]  }
   0x1   :  { %v34_v0 = vld [vmem:[%s833_s0] sm:$0xff]  ;;  %v35_v1 = vld [vmem:[%s833_s0 + $0x8] sm:$0xff]  ;;  %658 = vset.pattern.permute.xlu0 %v664_v3  ;;  %659 = vset.pattern.permute.xlu1 %v664_v3  ;;  %v14_v4 = vstv %s836_s8  ;;  %v42_v7 = vld [vmem:[%s835_s2 + $0x10] sm:$0xff]  ;;  %s668_s0 = smov 80   ;;  %s669_s19 = smov 32  }
   0x2   :  { %v36_v2 = vld [vmem:[%s834_s1] sm:$0xff]  ;;  %v628_v5 = vpack.c.bf16 %v35_v1, %v34_v0  ;;  %15 = vst [vmem:[#allocation2] sm:$0x1] %v14_v4  ;;  %v37_v8 = vld [vmem:[%s834_s1 + $0x8] sm:$0xff]  ;;  %56 = vperm.xlu1 %659, %v42_v7   ;;  %v38_v10 = vld [vmem:[%s834_s1 + $0x10] sm:$0xff]  ;;  %s670_s20 = smov 48  }
   0x3   :  { %594 = vmatprep.mubr.msk.f32.mxu0 %vm64_vm0, %v36_v2  ;;  %v40_v6 = vld [vmem:[%s835_s2] sm:$0xff]  ;;  %v41_v9 = vld [vmem:[%s835_s2 + $0x8] sm:$0xff]  ;;  %v43_v11 = vld [vmem:[%s835_s2 + $0x18] sm:$0xff] }
   0x4   :  { %629 = vmatprep.subr.bf16.mxu0 %v628_v5  ;;  %46 = vperm.xlu0 %658, %v40_v6   ;;  %v39_v12 = vld [vmem:[%s834_s1 + $0x18] sm:$0xff]  ;;  %v170_v13 = vld [vmem:[%s837_s4] sm:$0xff]  ;;  %v171_v14 = vld [vmem:[%s837_s4 + $0x8] sm:$0xff] }
   0x5   :  { %631 = vmatpush3.bf16.msra.mxu0 %v628_v5  ;;  %v172_v15 = vld [vmem:[%s837_s4 + $0x10] sm:$0xff]  ;;  %v173_v16 = vld [vmem:[%s837_s4 + $0x18] sm:$0xff]  ;;  %v300_v17 = vld [vmem:[%s838_s6] sm:$0xff]  ;;  %s671_s4 = smov 16  }
   0x6   :  { %61 = vperm.xlu1 %659, %v43_v11   ;;  %v301_v18 = vld [vmem:[%s838_s6 + $0x8] sm:$0xff]  ;;  %v302_v19 = vld [vmem:[%s838_s6 + $0x10] sm:$0xff]  ;;  %v303_v20 = vld [vmem:[%s838_s6 + $0x18] sm:$0xff] }
   0x7   :  { %v425_v21 = vld [vmem:[%s839_s7] sm:$0xff]  ;;  %v426_v22 = vld [vmem:[%s839_s7 + $0x8] sm:$0xff]  ;;  %v427_v23 = vld [vmem:[%s839_s7 + $0x10] sm:$0xff] }
   0x8   :  { %595 = vmatmul.mubr.msk.f32.vlgmr.msra.gmra.mrb[0].mxu0 %vm64_vm0, %v37_v8  ;;  %51 = vperm.xlu0 %658, %v41_v9   ;;  %v428_v24 = vld [vmem:[%s839_s7 + $0x18] sm:$0xff]  ;;  %v166_v26 = vld [vmem:[%s840_s3] sm:$0xff]  ;;  %v167_v45 = vld [vmem:[%s840_s3 + $0x8] sm:$0xff] }
   0x9   :  { %597 = vmatprep.mubr.msk.f32.mxu0 %vm64_vm0, %v38_v10  ;;  %v429_v25 = vld [vmem:[#allocation2] sm:$0x1]  ;;  %608 = vmatprep.mubr.msk.f32.mxu1 %vm194_vm1, %v166_v26  ;;  %v168_v46 = vld [vmem:[%s840_s3 + $0x10] sm:$0xff]  ;;  %v169_v47 = vld [vmem:[%s840_s3 + $0x18] sm:$0xff] }
   0xa   :  { %181 = vperm.xlu1 %659, %v171_v14   ;;  %v296_v48 = vld [vmem:[%s841_s5] sm:$0xff]  ;;  %v297_v3 = vld [vmem:[%s841_s5 + $0x8] sm:$0xff]  ;;  %v298_v4 = vld [vmem:[%s841_s5 + $0x10] sm:$0xff] }
   0xb   :  { %v299_v5 = vld [vmem:[%s841_s5 + $0x18] sm:$0xff]  ;;  %s665_s5 = smov 96  }
   0xc   :  { %598 = vmatmul.mubr.msk.f32.gmra.mrb[2].mxu0 %vm64_vm0, %v39_v12  ;;  %176 = vperm.xlu0 %658, %v170_v13  }
   0xd   :  { %622 = vmatprep.mubr.msk.f32.mxu0 %vm194_vm1, %v296_v48 }
   0xe   :  { %191 = vperm.xlu1 %659, %v173_v16  }
  0x10   :  { %186 = vperm.xlu0 %658, %v172_v15  }
  0x12   :  { %311 = vperm.xlu1 %659, %v301_v18  }
  0x14   :  { %306 = vperm.xlu0 %658, %v300_v17  }
  0x16   :  { %321 = vperm.xlu1 %659, %v303_v20  }
  0x18   :  { %316 = vperm.xlu0 %658, %v302_v19  }
  0x1a   :  { %437 = vperm.xlu1 %659, %v426_v22  }
  0x1c   :  { %432 = vperm.xlu0 %658, %v425_v21  }
  0x1e   :  { %447 = vperm.xlu1 %659, %v428_v24  }
  0x20   :  { %442 = vperm.xlu0 %658, %v427_v23  }
  0x24   :  { %465 = vperm.xlu0 %658, %v429_v25  }
  0x81   :  { %v57_v28 = vpop.permute.xlu1 %56 }
  0x83   :  { %v47_v27 = vpop.permute.xlu0 %46 }
  0x85   :  { %v62_v35 = vpop.permute.xlu1 %61 }
  0x87   :  { %v52_v29 = vpop.permute.xlu0 %51 }
  0x89   :  { %v182_v49 = vpop.permute.xlu1 %181 }
  0x8b   :  { %v177_v50 = vpop.permute.xlu0 %176 }
  0x8d   :  { %v192_v56 = vpop.permute.xlu1 %191 }
  0x8f   :  { %v187_v59 = vpop.permute.xlu0 %186 }
  0x91   :  { %v312_v7 = vpop.permute.xlu1 %311 }
  0x93   :  { %v307_v6 = vpop.permute.xlu0 %306 }
  0x95   :  { %v322_v9 = vpop.permute.xlu1 %321 }
  0x97   :  { %v317_v8 = vpop.permute.xlu0 %316 }
  0x99   :  { %v438_v16 = vpop.permute.xlu1 %437 }
  0x9b   :  { %v433_v14 = vpop.permute.xlu0 %432 }
  0xdb   :  { %v596_v30 = vpop.f32.mrb[0].mxu0 }
  0xdc   :  { %v149_v31 = vadd.f32 %v596_v30, %v52_v29  ;;  %v143_v32 = vpop.f32.mrb[1].mxu0  ;;  %v448_v29 = vpop.permute.xlu1 %447 }
  0xdd   :  { %v144_v33 = vadd.f32 %v143_v32, %v47_v27  ;;  %v443_v27 = vpop.permute.xlu0 %442  ;;  %v468_v32 = vlaneseq }
  0xde   :  { %v163_v34 = vmax.f32 %v149_v31, 0.0 }
  0xdf   :  { %v162_v36 = vmax.f32 %v144_v33, 0.0  ;;  %v599_v37 = vpop.f32.mrb[2].mxu0 }
  0xe0   :  { %v159_v38 = vadd.f32 %v599_v37, %v62_v35  ;;  %v153_v39 = vpop.f32.mrb[3].mxu0  ;;  %v469_v35 = vshrl.u32 %v468_v32, 7 }
  0xe1   :  { %v154_v40 = vadd.f32 %v153_v39, %v57_v28  ;;  %v632_v41 = vpack.c.bf16 %v163_v34, %v162_v36 }
  0xe2   :  { %v165_v42 = vmax.f32 %v159_v38, 0.0  ;;  %v470_v38 = vsub.s32 0, %v469_v35 }
  0xe3   :  { %v164_v43 = vmax.f32 %v154_v40, 0.0  ;;  %633 = vmatprep.subr.bf16.mxu1 %v632_v41  ;;  %v466_v40 = vpop.permute.xlu0 %465 }
  0xe4   :  { %635 = vmatpush3.bf16.msra.mxu1 %v632_v41 }
  0xe5   :  { %v636_v44 = vpack.c.bf16 %v165_v42, %v164_v43  ;;  %v471_v42 = vrot.slane %v466_v40, %v470_v38 }
  0xe7   :  { %637 = vmatprep.subr.bf16.mxu1 %v636_v44 }
  0xe8   :  { %639 = vmatpush3.bf16.msra.mxu1 %v636_v44 }
  0xeb   :  { %609 = vmatmul.mubr.msk.f32.vlgmr.msra.gmra.mrb[0].mxu1 %vm194_vm1, %v167_v45 }
  0xec   :  { %611 = vmatprep.mubr.msk.f32.mxu1 %vm194_vm1, %v168_v46 }
  0xef   :  { %612 = vmatmul.mubr.msk.f32.gmra.mrb[2].mxu1 %vm194_vm1, %v169_v47 }
 0x1be   :  { %v610_v51 = vpop.f32.mrb[0].mxu1 }
 0x1bf   :  { %v279_v52 = vadd.f32 %v610_v51, %v182_v49  ;;  %v273_v53 = vpop.f32.mrb[1].mxu1  ;;  %v672_v51 = vmov 1983009808  }
 0x1c0   :  { %v274_v54 = vadd.f32 %v273_v53, %v177_v50 }
 0x1c1   :  { %v293_v55 = vmax.f32 %v279_v52, 0.0  ;;  %v503_v52 = vunpack.c.l.s4 %v672_v51 }
 0x1c2   :  { %v292_v57 = vmax.f32 %v274_v54, 0.0  ;;  %v613_v58 = vpop.f32.mrb[2].mxu1 }
 0x1c3   :  { %v289_v60 = vadd.f32 %v613_v58, %v192_v56  ;;  %v283_v61 = vpop.f32.mrb[3].mxu1  ;;  %v673_v56 = vmov 1934713408  }
 0x1c4   :  { %v640_v62 = vpack.c.bf16 %v293_v55, %v292_v57  ;;  %v284_v63 = vadd.f32 %v283_v61, %v187_v59  ;;  %v504_v55 = vunpack.c.0.s8 %v503_v52  ;;  %v535_v57 = vunpack.c.l.s4 %v673_v56 }
 0x1c5   :  { %v295_v0 = vmax.f32 %v289_v60, 0.0 }
 0x1c6   :  { %v294_v1 = vmax.f32 %v284_v63, 0.0  ;;  %641 = vmatprep.subr.bf16.mxu0 %v640_v62  ;;  %v507_v61 = vsub.s32 %v504_v55, %v469_v35  ;;  %v536_v63 = vunpack.c.0.s8 %v535_v57 }
 0x1c7   :  { %643 = vmatpush3.bf16.msra.mxu0 %v640_v62 }
 0x1c8   :  { %v644_v2 = vpack.c.bf16 %v295_v0, %v294_v1 }
 0x1ca   :  { %645 = vmatprep.subr.bf16.mxu0 %v644_v2 }
 0x1cb   :  { %647 = vmatpush3.bf16.msra.mxu0 %v644_v2 }
 0x1ce   :  { %623 = vmatmul.mubr.msk.f32.vlgmr.msra.gmra.mrb[4].mxu0 %vm194_vm1, %v297_v3 }
 0x1cf   :  { %625 = vmatprep.mubr.msk.f32.mxu0 %vm194_vm1, %v298_v4 }
 0x1d2   :  { %626 = vmatmul.mubr.msk.f32.gmra.mrb[6].mxu0 %vm194_vm1, %v299_v5  ;;  %v539_v5 = vsub.s32 %v536_v63, %v469_v35 }
 0x2a1   :  { %v624_v10 = vpop.f32.mrb[4].mxu0 }
 0x2a2   :  { %v408_v11 = vadd.f32 %v624_v10, %v312_v7  ;;  %v402_v12 = vpop.f32.mrb[5].mxu0 }
 0x2a3   :  { %v403_v13 = vadd.f32 %v402_v12, %v307_v6 }
 0x2a4   :  { %v422_v15 = vmax.f32 %v408_v11, 0.0 }
 0x2a5   :  { %v421_v17 = vmax.f32 %v403_v13, 0.0  ;;  %v627_v18 = vpop.f32.mrb[6].mxu0 }
 0x2a6   :  { %v451_v19 = vmul.f32 %v438_v16, %v422_v15  ;;  %v418_v20 = vadd.f32 %v627_v18, %v322_v9  ;;  %v412_v21 = vpop.f32.mrb[7].mxu0 }
 0x2a7   :  { %v450_v22 = vmul.f32 %v433_v14, %v421_v17  ;;  %v413_v23 = vadd.f32 %v412_v21, %v317_v8 }
 0x2a8   :  { %v424_v25 = vmax.f32 %v418_v20, 0.0 }
 0x2a9   :  { %v454_v24 = vadd.f32 %v451_v19, %v450_v22  ;;  %v423_v26 = vmax.f32 %v413_v23, 0.0 }
 0x2aa   :  { %v453_v30 = vmul.f32 %v448_v29, %v424_v25 }
 0x2ab   :  { %v452_v28 = vmul.f32 %v443_v27, %v423_v26 }
 0x2ad   :  { %v455_v31 = vadd.f32 %v454_v24, %v452_v28 }
 0x2af   :  { %v456_v33 = vadd.f32 %v455_v31, %v453_v30 }
 0x2b1   :  { %v457_v34 = vrot.slane %v456_v33, 4 }
 0x2b3   :  { %v458_v36 = vadd.f32 %v457_v34, %v456_v33 }
 0x2b5   :  { %v459_v37 = vrot.slane %v458_v36, 2 }
 0x2b7   :  { %v460_v39 = vadd.f32 %v459_v37, %v458_v36 }
 0x2b9   :  { %v461_v41 = vrot.slane %v460_v39, 1 }
 0x2bb   :  { %v462_v43 = vadd.f32 %v461_v41, %v460_v39 }
 0x2bd   :  { %v472_v44 = vadd.f32 %v471_v42, %v462_v43 }
 0x2bf   :  { %v567_v45 = vmul.f32 -1.442695, %v472_v44 }
 0x2c1   :  { %660 = vpow2.f32 %v567_v45 }
 0x2cb   :  { %v661_v46 = vpop.eup %660 }
 0x2cc   :  { %v476_v47 = vadd.f32 1.0, %v661_v46 }
 0x2ce   :  { %662 = vrcp.f32 %v476_v47 }
 0x2d8   :  { %v663_v48 = vpop.eup %662 }
 0x2d9   :  { %483 = vrot.lane.b32.xlu0 %v663_v48, %s665_s5  ;;  %480 = vrot.lane.b32.xlu1 %v663_v48, %s666_s17 }
 0x2dd   :  { %489 = vrot.lane.b32.xlu0 %v663_v48, %s667_s18  ;;  %486 = vrot.lane.b32.xlu1 %v663_v48, %s668_s0 }
 0x2e1   :  { %495 = vrot.lane.b32.xlu0 %v663_v48, %s669_s19  ;;  %492 = vrot.lane.b32.xlu1 %v663_v48, %s670_s20 }
 0x2e5   :  { %498 = vrot.lane.b32.xlu1 %v663_v48, %s671_s4 }
 0x34b   :  { %v484_v49 = vpop.permute.xlu0 %483  ;;  %v481_v50 = vpop.permute.xlu1 %480 }
 0x34c   :  { %v501_v62 = vcombine.low %v663_v48, %v484_v49 }
 0x34e   :  { %v508_v3 = vrot.slane %v501_v62, %v507_v61 }
 0x34f   :  { %v490_v53 = vpop.permute.xlu0 %489  ;;  %v487_v54 = vpop.permute.xlu1 %486 }
 0x350   :  { %v509_v58 = vcombine.low %v481_v50, %v487_v54 }
 0x352   :  { %v516_v0 = vrot.slane %v509_v58, %v507_v61 }
 0x353   :  { %v496_v59 = vpop.permute.xlu0 %495  ;;  %v493_v60 = vpop.permute.xlu1 %492 }
 0x354   :  { %v517_v1 = vcombine.low %v490_v53, %v496_v59  ;;  %v533_v6 = vcombine.low %v508_v3, %v516_v0 }
 0x356   :  { %v524_v7 = vrot.slane %v517_v1, %v507_v61  ;;  %v540_v10 = vrot.slane %v533_v6, %v539_v5 }
 0x357   :  { %v499_v2 = vpop.permute.xlu1 %498 }
 0x358   :  { %v525_v4 = vcombine.low %v493_v60, %v499_v2 }
 0x35a   :  { %v532_v8 = vrot.slane %v525_v4, %v507_v61 }
 0x35c   :  { %v541_v9 = vcombine.low %v524_v7, %v532_v8 }
 0x35e   :  { %v548_v11 = vrot.slane %v541_v9, %v539_v5 }
 0x360   :  { %v549_v12 = vcombine.low %v540_v10, %v548_v11 }
 0x362   :  { %550 = vst.msk [vmem:[%s842_s9] sm:$0xff] %vm64_vm0, %v549_v12 }

</bundles_post_ra>
